<compile_context>
chip_gen: v6e
topology: v6e:2x2x1
jax: 0.10.0
libtpu: 0.0.40
codegen_flags: <defaults>
</compile_context>

<pallas_src>
import functools
import math

import jax
import jax.numpy as jnp
from jax import lax
from jax.experimental import pallas as pl
from jax.experimental.pallas import tpu as pltpu


_TS = 8  # timesteps per slab (sublane height of the per-slab scratch)


def _round_up(x, m):
    return (x + m - 1) // m * m


def selective_scan_kernel(u_ref, dt_ref, At_ref, Bg_ref, Cg_ref, E_ref,
                          D_ref, db_ref, y_ref,
                          dA_s, dBu_s, Cx_s, h_scr, *, ts):
    # u_ref/dt_ref/y_ref: (CL, KDp)      At_ref: (Np, KDp)
    # Bg_ref/Cg_ref:      (CL*Np, K)     E_ref:  (K, KDp) 0/1 group->chan map
    # D_ref/db_ref:       (1, KDp)
    # dA_s/dBu_s/Cx_s:    (ts, Np, KDp)  per-slab scratch
    # h_scr:              (Np, KDp)      state, persists across L-chunks
    chunk = pl.program_id(1)

    @pl.when(chunk == 0)
    def _():
        h_scr[...] = jnp.zeros_like(h_scr)

    cl = u_ref.shape[0]
    n = h_scr.shape[0]
    slab_rows = ts * n  # rows of grouped B/C per slab

    # Loop invariants: load/cast once per chunk (JAX does not CSE broadcasts).
    At = At_ref[...]                                   # (Np, KDp)
    Dp = D_ref[...]                                    # (1, KDp)
    db = db_ref[...]                                   # (1, KDp)
    E_bf = E_ref[...].astype(jnp.bfloat16)             # 0/1, exact in bf16

    def expand(g):
        # Exact-enough f32 group->channel replication on the MXU.
        # E is 0/1 so every output column copies exactly one input column;
        # a hi/lo split keeps ~16 mantissa bits (rel err ~1e-5) using two
        # single-pass bf16 matmuls instead of precision=HIGHEST.
        hi = g.astype(jnp.bfloat16)
        lo = (g - hi.astype(jnp.float32)).astype(jnp.bfloat16)
        return (jnp.dot(hi, E_bf, preferred_element_type=jnp.float32)
                + jnp.dot(lo, E_bf, preferred_element_type=jnp.float32))

    def slab_body(s, h):
        base = pl.multiple_of(s * ts, ts)              # timestep offset
        r0 = pl.multiple_of(s * slab_rows, slab_rows)  # grouped B/C row offset

        # ---- per-slab precompute (EUP/MXU/VALU, off the recurrence path) ---
        u_slab = u_ref[pl.ds(base, ts), :]                          # (ts, KDp)
        delta = jax.nn.softplus(dt_ref[pl.ds(base, ts), :] + db)    # (ts, KDp)
        du_skip = u_slab * Dp                                       # D*u rows
        dA_s[...] = jnp.exp(delta[:, None, :] * At[None, :, :])     # (ts,Np,KDp)
        Bx = expand(Bg_ref[pl.ds(r0, slab_rows), :])                # (ts*Np,KDp)
        Cx = expand(Cg_ref[pl.ds(r0, slab_rows), :])                # (ts*Np,KDp)
        dBu_s[...] = Bx.reshape(ts, n, -1) * (delta * u_slab)[:, None, :]
        Cx_s[...] = Cx.reshape(ts, n, -1)

        # ---- sequential scan over the ts timesteps of the slab -------------
        for t in range(ts):                            # statically unrolled
            h = dA_s[t] * h + dBu_s[t]                 # (Np, KDp)
            y_row = jnp.sum(h * Cx_s[t], axis=0, keepdims=True)     # (1, KDp)
            # Direct lane-dense single-row store (no where-scatter).
            y_ref[pl.ds(base + t, 1), :] = y_row + du_skip[t:t + 1, :]
        return h

    h = lax.fori_loop(0, cl // ts, slab_body, h_scr[...])
    h_scr[...] = h                                     # spill once per chunk


def selective_scan_pallas(xs, dts, As, Bs, Cs, Ds, delta_bias, *, l_chunk=None):
    """Matches sub_selectiveScan_model.forward: returns (B, K, D, H, W)."""
    Bb, KD, L = xs.shape
    K = Bs.shape[1]
    Dd = KD // K
    N = As.shape[1]
    H = W = int(math.isqrt(L))
    assert H * W == L

    f32 = jnp.float32

    # Lane padding: channels -> multiple of 128 (lane-dense VPU ops / stores),
    # state dim -> multiple of 8 (sublane alignment).
    KDp = max(_round_up(KD, 128), 128)
    Np = max(_round_up(N, 8), 8)

    if l_chunk is None:
        l_chunk = L
        for cand in (256, 128, 64, 32, 16, 8):
            if L % cand == 0:
                l_chunk = cand
                break
    # TODO(synk): sequence lengths that are not a multiple of 8 would need an
    # extra padded/masked tail chunk; not required for square H*W inputs here.
    assert L % l_chunk == 0 and l_chunk % _TS == 0
    CL = l_chunk

    # ---- wrapper glue: layout transposes + zero padding (no D x repeat) ----
    u_t = jnp.transpose(xs, (0, 2, 1)).astype(f32)              # (B, L, KD)
    dt_t = jnp.transpose(dts, (0, 2, 1)).astype(f32)            # (B, L, KD)
    At = jnp.transpose(As, (1, 0)).astype(f32)                  # (N, KD)
    Bg = jnp.transpose(Bs, (0, 3, 2, 1)).astype(f32)            # (B, L, N, K)
    Cg = jnp.transpose(Cs, (0, 3, 2, 1)).astype(f32)            # (B, L, N, K)
    D2 = Ds.reshape(1, KD).astype(f32)
    db2 = delta_bias.reshape(1, KD).astype(f32)

    pad_c = KDp - KD
    pad_n = Np - N
    if pad_c:
        u_t = jnp.pad(u_t, ((0, 0), (0, 0), (0, pad_c)))
        dt_t = jnp.pad(dt_t, ((0, 0), (0, 0), (0, pad_c)))
        At = jnp.pad(At, ((0, 0), (0, pad_c)))
        D2 = jnp.pad(D2, ((0, 0), (0, pad_c)))
        db2 = jnp.pad(db2, ((0, 0), (0, pad_c)))
    if pad_n:
        At = jnp.pad(At, ((0, pad_n), (0, 0)))
        Bg = jnp.pad(Bg, ((0, 0), (0, 0), (0, pad_n), (0, 0)))
        Cg = jnp.pad(Cg, ((0, 0), (0, 0), (0, pad_n), (0, 0)))
    Bg = Bg.reshape(Bb, L * Np, K)                              # fuse (L, N) axes
    Cg = Cg.reshape(Bb, L * Np, K)

    # 0/1 group -> channel expansion matrix (zero columns for padded channels).
    E = (jnp.arange(KDp)[None, :] // Dd == jnp.arange(K)[:, None]).astype(f32)

    grid = (Bb, L // CL)
    kernel = functools.partial(selective_scan_kernel, ts=_TS)

    out = pl.pallas_call(
        kernel,
        out_shape=jax.ShapeDtypeStruct((Bb, L, KDp), f32),
        grid_spec=pltpu.PrefetchScalarGridSpec(
            num_scalar_prefetch=0,
            grid=grid,
            in_specs=[
                pl.BlockSpec((None, CL, KDp), lambda b, c: (b, c, 0)),       # u
                pl.BlockSpec((None, CL, KDp), lambda b, c: (b, c, 0)),       # dt
                pl.BlockSpec((Np, KDp), lambda b, c: (0, 0)),                # A^T
                pl.BlockSpec((None, CL * Np, K), lambda b, c: (b, c, 0)),    # B (grouped)
                pl.BlockSpec((None, CL * Np, K), lambda b, c: (b, c, 0)),    # C (grouped)
                pl.BlockSpec((K, KDp), lambda b, c: (0, 0)),                 # E
                pl.BlockSpec((1, KDp), lambda b, c: (0, 0)),                 # D
                pl.BlockSpec((1, KDp), lambda b, c: (0, 0)),                 # delta_bias
            ],
            out_specs=pl.BlockSpec((None, CL, KDp), lambda b, c: (b, c, 0)),
            scratch_shapes=[
                pltpu.VMEM((_TS, Np, KDp), f32),      # dA slab
                pltpu.VMEM((_TS, Np, KDp), f32),      # dBu slab (delta*u folded in)
                pltpu.VMEM((_TS, Np, KDp), f32),      # expanded C slab
                pltpu.VMEM((Np, KDp), f32),           # state h (persists across chunks)
            ],
        ),
        compiler_params=pltpu.CompilerParams(
            dimension_semantics=("parallel", "arbitrary"),
            vmem_limit_bytes=48 * 1024 * 1024,        # headroom under v7x 64 MiB
        ),
    )(u_t, dt_t, At, Bg, Cg, E, D2, db2)

    ys = jnp.transpose(out[:, :, :KD], (0, 2, 1))               # (B, KD, L)
    return ys.reshape(Bb, K, Dd, H, W)


def selective_scan_reference(xs, dts, As, Bs, Cs, Ds, delta_bias):
    """Pure-JAX reference of selective_scan_ref semantics (for verification)."""
    Bb, KD, L = xs.shape
    K = Bs.shape[1]
    D = KD // K
    H = W = int(math.isqrt(L))

    delta = jax.nn.softplus(dts + delta_bias[None, :, None])     # (B,KD,L)
    Bexp = jnp.repeat(Bs, D, axis=1)                             # (B,KD,N,L)
    Cexp = jnp.repeat(Cs, D, axis=1)                             # (B,KD,N,L)
    dA = jnp.exp(delta[:, :, None, :] * As[None, :, :, None])    # (B,KD,N,L)
    dBu = delta[:, :, None, :] * Bexp * xs[:, :, None, :]        # (B,KD,N,L)

    def step(h, t):
        h = dA[..., t] * h + dBu[..., t]
        y = jnp.sum(h * Cexp[..., t], axis=-1)                   # (B,KD)
        return h, y

    h0 = jnp.zeros((Bb, KD, As.shape[1]), xs.dtype)
    _, ys = lax.scan(step, h0, jnp.arange(L))
    ys = jnp.transpose(ys, (1, 2, 0))                            # (B,KD,L)
    ys = ys + Ds[None, :, None] * xs
    return ys.reshape(Bb, K, D, H, W)


if __name__ == "__main__":
    # Small shapes consistent with the module: K=4 fixed by forward().
    Bb, K, Dd, N, H = 2, 4, 8, 8, 8
    KD = K * Dd
    L = H * H

    key = jax.random.PRNGKey(0)
    k = jax.random.split(key, 7)
    xs = jax.random.normal(k[0], (Bb, KD, L), jnp.float32)
    dts = 0.5 * jax.random.normal(k[1], (Bb, KD, L), jnp.float32)
    As = -jnp.exp(0.5 * jax.random.normal(k[2], (KD, N), jnp.float32))
    Bs = jax.random.normal(k[3], (Bb, K, N, L), jnp.float32)
    Cs = jax.random.normal(k[4], (Bb, K, N, L), jnp.float32)
    Ds = jax.random.normal(k[5], (KD,), jnp.float32)
    delta_bias = 0.1 * jax.random.normal(k[6], (KD,), jnp.float32)

    # l_chunk=16 -> grid (2, 4): exercises persistent-state L-chunking
    # (2 slabs of 8 timesteps per chunk).
    ys = selective_scan_pallas(xs, dts, As, Bs, Cs, Ds, delta_bias, l_chunk=16)
    ys = jax.block_until_ready(ys)

    ys_ref = jax.block_until_ready(
        selective_scan_reference(xs, dts, As, Bs, Cs, Ds, delta_bias))

    assert ys.shape == (Bb, K, Dd, H, H), ys.shape
    err = float(jnp.max(jnp.abs(ys - ys_ref)))
    assert jnp.allclose(ys, ys_ref, atol=1e-3, rtol=1e-3), err

    print("KERNEL_OK")
</pallas_src>

<mosaic_0001>
module attributes {stable_mosaic.version = 11 : i64} {
  func.func @selective_scan_kernel(%arg0: i32, %arg1: i32, %arg2: memref<1x16x128xf32, #tpu.memory_space<vmem>>, %arg3: memref<1x16x128xf32, #tpu.memory_space<vmem>>, %arg4: memref<8x128xf32, #tpu.memory_space<vmem>>, %arg5: memref<1x128x4xf32, #tpu.memory_space<vmem>>, %arg6: memref<1x128x4xf32, #tpu.memory_space<vmem>>, %arg7: memref<4x128xf32, #tpu.memory_space<vmem>>, %arg8: memref<1x128xf32, #tpu.memory_space<vmem>>, %arg9: memref<1x128xf32, #tpu.memory_space<vmem>>, %arg10: memref<1x16x128xf32, #tpu.memory_space<vmem>>, %arg11: memref<8x8x128xf32, #tpu.memory_space<vmem>>, %arg12: memref<8x8x128xf32, #tpu.memory_space<vmem>>, %arg13: memref<8x8x128xf32, #tpu.memory_space<vmem>>, %arg14: memref<8x128xf32, #tpu.memory_space<vmem>>) attributes {dimension_semantics = [#tpu.dimension_semantics<parallel>, #tpu.dimension_semantics<arbitrary>], iteration_bounds = array<i64: 2, 4>, scalar_prefetch = 0 : i64, scratch_operands = 4 : i64, tpu.core_type = #tpu.core_type<tc>, window_params = [{transform_indices = @transform_0, window_bounds = array<i64: 1, 16, 128>}, {transform_indices = @transform_1, window_bounds = array<i64: 1, 16, 128>}, {pipeline_mode = #tpu.pipeline_mode<synchronous>, transform_indices = @transform_2, window_bounds = array<i64: 8, 128>}, {transform_indices = @transform_3, window_bounds = array<i64: 1, 128, 4>}, {transform_indices = @transform_4, window_bounds = array<i64: 1, 128, 4>}, {pipeline_mode = #tpu.pipeline_mode<synchronous>, transform_indices = @transform_5, window_bounds = array<i64: 4, 128>}, {pipeline_mode = #tpu.pipeline_mode<synchronous>, transform_indices = @transform_6, window_bounds = array<i64: 1, 128>}, {pipeline_mode = #tpu.pipeline_mode<synchronous>, transform_indices = @transform_7, window_bounds = array<i64: 1, 128>}, {transform_indices = @transform_8, window_bounds = array<i64: 1, 16, 128>}]} {
    %c0_i32 = arith.constant 0 : i32
    %0 = arith.cmpi eq, %arg1, %c0_i32 : i32
    %1 = arith.extui %0 : i1 to i32
    %c0_i32_0 = arith.constant 0 : i32
    %2 = arith.cmpi ne, %1, %c0_i32_0 : i32
    scf.if %2 {
      %cst = arith.constant 0.000000e+00 : f32
      %12 = vector.broadcast %cst : f32 to vector<8x128xf32>
      %c0_14 = arith.constant 0 : index
      %c0_15 = arith.constant 0 : index
      %13 = vector.load %arg14[%c0_14, %c0_15] : memref<8x128xf32, #tpu.memory_space<vmem>>, vector<8x128xf32>
      tpu.vector_store %arg14[%c0_14, %c0_15], %12 {strides = array<i32>} : memref<8x128xf32, #tpu.memory_space<vmem>>, vector<8x128xf32>,
    } else {
    }
    %c0 = arith.constant 0 : index
    %c0_1 = arith.constant 0 : index
    %3 = vector.load %arg4[%c0, %c0_1] : memref<8x128xf32, #tpu.memory_space<vmem>>, vector<8x128xf32>
    %c0_2 = arith.constant 0 : index
    %c0_3 = arith.constant 0 : index
    %4 = vector.load %arg8[%c0_2, %c0_3] : memref<1x128xf32, #tpu.memory_space<vmem>>, vector<1x128xf32>
    %c0_4 = arith.constant 0 : index
    %c0_5 = arith.constant 0 : index
    %5 = vector.load %arg9[%c0_4, %c0_5] : memref<1x128xf32, #tpu.memory_space<vmem>>, vector<1x128xf32>
    %c0_6 = arith.constant 0 : index
    %c0_7 = arith.constant 0 : index
    %6 = vector.load %arg7[%c0_6, %c0_7] : memref<4x128xf32, #tpu.memory_space<vmem>>, vector<4x128xf32>
    %7 = arith.truncf %6 : vector<4x128xf32> to vector<4x128xbf16>
    %c0_8 = arith.constant 0 : index
    %c0_9 = arith.constant 0 : index
    %8 = vector.load %arg14[%c0_8, %c0_9] : memref<8x128xf32, #tpu.memory_space<vmem>>, vector<8x128xf32>
    %c0_i32_10 = arith.constant 0 : i32
    %c2_i32 = arith.constant 2 : i32
    %9 = arith.addi %c0_i32_10, %c2_i32 : i32
    %c1_i32 = arith.constant 1 : i32
    %10 = scf.for %arg15 = %c0_i32_10 to %9 step %c1_i32 iter_args(%arg16 = %8) -> (vector<8x128xf32>)  : i32 {
      %c8_i32 = arith.constant 8 : i32
      %12 = arith.muli %arg15, %c8_i32 : i32
      %13 = tpu.assume_multiple %12, 8 : i32
      %c64_i32 = arith.constant 64 : i32
      %14 = arith.muli %arg15, %c64_i32 : i32
      %15 = tpu.assume_multiple %14, 64 : i32
      %c0_14 = arith.constant 0 : index
      %16 = arith.index_cast %13 : i32 to index
      %c0_15 = arith.constant 0 : index
      %17 = vector.load %arg2[%c0_14, %16, %c0_15] : memref<1x16x128xf32, #tpu.memory_space<vmem>>, vector<1x8x128xf32>
      %18 = vector.shape_cast %17 : vector<1x8x128xf32> to vector<8x128xf32>
      %c0_16 = arith.constant 0 : index
      %19 = arith.index_cast %13 : i32 to index
      %c0_17 = arith.constant 0 : index
      %20 = vector.load %arg3[%c0_16, %19, %c0_17] : memref<1x16x128xf32, #tpu.memory_space<vmem>>, vector<1x8x128xf32>
      %21 = vector.shape_cast %20 : vector<1x8x128xf32> to vector<8x128xf32>
      %22 = vector.broadcast %5 : vector<1x128xf32> to vector<8x128xf32>
      %23 = arith.addf %21, %22 : vector<8x128xf32>
      %cst = arith.constant 0.000000e+00 : f32
      %24 = vector.broadcast %cst : f32 to vector<8x128xf32>
      %25 = arith.maximumf %23, %24 : vector<8x128xf32>
      %26 = vector.broadcast %cst : f32 to vector<8x128xf32>
      %27 = arith.subf %23, %26 : vector<8x128xf32>
      %28 = arith.cmpf one, %27, %27 : vector<8x128xf32>
      %29 = vector.broadcast %cst : f32 to vector<8x128xf32>
      %30 = arith.addf %23, %29 : vector<8x128xf32>
      %31 = math.absf %27 : vector<8x128xf32>
      %cst_18 = arith.constant 0.000000e+00 : f32
      %32 = vector.broadcast %cst_18 : f32 to vector<8x128xf32>
      %33 = arith.subf %32, %31 : vector<8x128xf32>
      %34 = math.exp %33 : vector<8x128xf32>
      %35 = math.log1p %34 : vector<8x128xf32>
      %36 = arith.addf %25, %35 : vector<8x128xf32>
      %37 = arith.select %28, %30, %36 : vector<8x128xi1>, vector<8x128xf32>
      %38 = vector.broadcast %4 : vector<1x128xf32> to vector<8x128xf32>
      %39 = arith.mulf %18, %38 : vector<8x128xf32>
      %40 = vector.shape_cast %37 : vector<8x128xf32> to vector<8x1x128xf32>
      %41 = vector.shape_cast %3 : vector<8x128xf32> to vector<1x8x128xf32>
      %42 = vector.broadcast %40 : vector<8x1x128xf32> to vector<8x8x128xf32>
      %43 = vector.broadcast %41 : vector<1x8x128xf32> to vector<8x8x128xf32>
      %44 = arith.mulf %42, %43 : vector<8x8x128xf32>
      %45 = math.exp %44 : vector<8x8x128xf32>
      %c0_19 = arith.constant 0 : index
      %c0_20 = arith.constant 0 : index
      %c0_21 = arith.constant 0 : index
      %46 = vector.load %arg11[%c0_19, %c0_20, %c0_21] : memref<8x8x128xf32, #tpu.memory_space<vmem>>, vector<8x8x128xf32>
      tpu.vector_store %arg11[%c0_19, %c0_20, %c0_21], %45 {strides = array<i32>} : memref<8x8x128xf32, #tpu.memory_space<vmem>>, vector<8x8x128xf32>,
      %c0_22 = arith.constant 0 : index
      %47 = arith.index_cast %15 : i32 to index
      %c0_23 = arith.constant 0 : index
      %48 = vector.load %arg5[%c0_22, %47, %c0_23] : memref<1x128x4xf32, #tpu.memory_space<vmem>>, vector<1x64x4xf32>
      %49 = vector.shape_cast %48 : vector<1x64x4xf32> to vector<64x4xf32>
      %50 = arith.truncf %49 : vector<64x4xf32> to vector<64x4xbf16>
      %51 = arith.extf %50 : vector<64x4xbf16> to vector<64x4xf32>
      %52 = arith.subf %49, %51 : vector<64x4xf32>
      %53 = arith.truncf %52 : vector<64x4xf32> to vector<64x4xbf16>
      %cst_24 = arith.constant dense<0.000000e+00> : vector<64x128xf32>
      %54 = tpu.matmul %50, %7, %cst_24 {dimension_numbers = #tpu.dot_dimension_numbers<[1], [0], [0], [1], [0, 0, 1, 1], [], []>} : vector<64x4xbf16>, vector<4x128xbf16>, vector<64x128xf32> -> vector<64x128xf32>
      %cst_25 = arith.constant dense<0.000000e+00> : vector<64x128xf32>
      %55 = tpu.matmul %53, %7, %cst_25 {dimension_numbers = #tpu.dot_dimension_numbers<[1], [0], [0], [1], [0, 0, 1, 1], [], []>} : vector<64x4xbf16>, vector<4x128xbf16>, vector<64x128xf32> -> vector<64x128xf32>
      %56 = arith.addf %54, %55 : vector<64x128xf32>
      %c0_26 = arith.constant 0 : index
      %57 = arith.index_cast %15 : i32 to index
      %c0_27 = arith.constant 0 : index
      %58 = vector.load %arg6[%c0_26, %57, %c0_27] : memref<1x128x4xf32, #tpu.memory_space<vmem>>, vector<1x64x4xf32>
      %59 = vector.shape_cast %58 : vector<1x64x4xf32> to vector<64x4xf32>
      %60 = arith.truncf %59 : vector<64x4xf32> to vector<64x4xbf16>
      %61 = arith.extf %60 : vector<64x4xbf16> to vector<64x4xf32>
      %62 = arith.subf %59, %61 : vector<64x4xf32>
      %63 = arith.truncf %62 : vector<64x4xf32> to vector<64x4xbf16>
      %cst_28 = arith.constant dense<0.000000e+00> : vector<64x128xf32>
      %64 = tpu.matmul %60, %7, %cst_28 {dimension_numbers = #tpu.dot_dimension_numbers<[1], [0], [0], [1], [0, 0, 1, 1], [], []>} : vector<64x4xbf16>, vector<4x128xbf16>, vector<64x128xf32> -> vector<64x128xf32>
      %cst_29 = arith.constant dense<0.000000e+00> : vector<64x128xf32>
      %65 = tpu.matmul %63, %7, %cst_29 {dimension_numbers = #tpu.dot_dimension_numbers<[1], [0], [0], [1], [0, 0, 1, 1], [], []>} : vector<64x4xbf16>, vector<4x128xbf16>, vector<64x128xf32> -> vector<64x128xf32>
      %66 = arith.addf %64, %65 : vector<64x128xf32>
      %67 = vector.shape_cast %56 : vector<64x128xf32> to vector<8x8x128xf32>
      %68 = arith.mulf %37, %18 : vector<8x128xf32>
      %69 = vector.shape_cast %68 : vector<8x128xf32> to vector<8x1x128xf32>
      %70 = vector.broadcast %69 : vector<8x1x128xf32> to vector<8x8x128xf32>
      %71 = arith.mulf %67, %70 : vector<8x8x128xf32>
      %c0_30 = arith.constant 0 : index
      %c0_31 = arith.constant 0 : index
      %c0_32 = arith.constant 0 : index
      %72 = vector.load %arg12[%c0_30, %c0_31, %c0_32] : memref<8x8x128xf32, #tpu.memory_space<vmem>>, vector<8x8x128xf32>
      tpu.vector_store %arg12[%c0_30, %c0_31, %c0_32], %71 {strides = array<i32>} : memref<8x8x128xf32, #tpu.memory_space<vmem>>, vector<8x8x128xf32>,
      %73 = vector.shape_cast %66 : vector<64x128xf32> to vector<8x8x128xf32>
      %c0_33 = arith.constant 0 : index
      %c0_34 = arith.constant 0 : index
      %c0_35 = arith.constant 0 : index
      %74 = vector.load %arg13[%c0_33, %c0_34, %c0_35] : memref<8x8x128xf32, #tpu.memory_space<vmem>>, vector<8x8x128xf32>
      tpu.vector_store %arg13[%c0_33, %c0_34, %c0_35], %73 {strides = array<i32>} : memref<8x8x128xf32, #tpu.memory_space<vmem>>, vector<8x8x128xf32>,
      %c0_36 = arith.constant 0 : index
      %c0_37 = arith.constant 0 : index
      %c0_38 = arith.constant 0 : index
      %75 = vector.load %arg11[%c0_36, %c0_37, %c0_38] : memref<8x8x128xf32, #tpu.memory_space<vmem>>, vector<1x8x128xf32>
      %76 = vector.shape_cast %75 : vector<1x8x128xf32> to vector<8x128xf32>
      %77 = arith.mulf %76, %arg16 : vector<8x128xf32>
      %c0_39 = arith.constant 0 : index
      %c0_40 = arith.constant 0 : index
      %c0_41 = arith.constant 0 : index
      %78 = vector.load %arg12[%c0_39, %c0_40, %c0_41] : memref<8x8x128xf32, #tpu.memory_space<vmem>>, vector<1x8x128xf32>
      %79 = vector.shape_cast %78 : vector<1x8x128xf32> to vector<8x128xf32>
      %80 = arith.addf %77, %79 : vector<8x128xf32>
      %c0_42 = arith.constant 0 : index
      %c0_43 = arith.constant 0 : index
      %c0_44 = arith.constant 0 : index
      %81 = vector.load %arg13[%c0_42, %c0_43, %c0_44] : memref<8x8x128xf32, #tpu.memory_space<vmem>>, vector<1x8x128xf32>
      %82 = vector.shape_cast %81 : vector<1x8x128xf32> to vector<8x128xf32>
      %83 = arith.mulf %80, %82 : vector<8x128xf32>
      %cst_45 = arith.constant dense<0.000000e+00> : vector<128xf32>
      %84 = vector.multi_reduction <add>, %83, %cst_45 [0] : vector<8x128xf32> to vector<128xf32>
      %85 = vector.shape_cast %84 : vector<128xf32> to vector<1x128xf32>
      %86 = vector.extract_strided_slice %39 {offsets = [0, 0], sizes = [1, 128], strides = [1, 1]} : vector<8x128xf32> to vector<1x128xf32>
      %87 = arith.addf %85, %86 : vector<1x128xf32>
      %c0_i32_46 = arith.constant 0 : i32
      %88 = arith.addi %13, %c0_i32_46 : i32
      %c0_47 = arith.constant 0 : index
      %89 = arith.index_cast %88 : i32 to index
      %c0_48 = arith.constant 0 : index
      %90 = vector.load %arg10[%c0_47, %89, %c0_48] : memref<1x16x128xf32, #tpu.memory_space<vmem>>, vector<1x1x128xf32>
      %91 = vector.shape_cast %90 : vector<1x1x128xf32> to vector<1x128xf32>
      %92 = vector.shape_cast %87 : vector<1x128xf32> to vector<1x1x128xf32>
      tpu.vector_store %arg10[%c0_47, %89, %c0_48], %92 {strides = array<i32>} : memref<1x16x128xf32, #tpu.memory_space<vmem>>, vector<1x1x128xf32>,
      %c1 = arith.constant 1 : index
      %c0_49 = arith.constant 0 : index
      %c0_50 = arith.constant 0 : index
      %93 = vector.load %arg11[%c1, %c0_49, %c0_50] : memref<8x8x128xf32, #tpu.memory_space<vmem>>, vector<1x8x128xf32>
      %94 = vector.shape_cast %93 : vector<1x8x128xf32> to vector<8x128xf32>
      %95 = arith.mulf %94, %80 : vector<8x128xf32>
      %c1_51 = arith.constant 1 : index
      %c0_52 = arith.constant 0 : index
      %c0_53 = arith.constant 0 : index
      %96 = vector.load %arg12[%c1_51, %c0_52, %c0_53] : memref<8x8x128xf32, #tpu.memory_space<vmem>>, vector<1x8x128xf32>
      %97 = vector.shape_cast %96 : vector<1x8x128xf32> to vector<8x128xf32>
      %98 = arith.addf %95, %97 : vector<8x128xf32>
      %c1_54 = arith.constant 1 : index
      %c0_55 = arith.constant 0 : index
      %c0_56 = arith.constant 0 : index
      %99 = vector.load %arg13[%c1_54, %c0_55, %c0_56] : memref<8x8x128xf32, #tpu.memory_space<vmem>>, vector<1x8x128xf32>
      %100 = vector.shape_cast %99 : vector<1x8x128xf32> to vector<8x128xf32>
      %101 = arith.mulf %98, %100 : vector<8x128xf32>
      %cst_57 = arith.constant dense<0.000000e+00> : vector<128xf32>
      %102 = vector.multi_reduction <add>, %101, %cst_57 [0] : vector<8x128xf32> to vector<128xf32>
      %103 = vector.shape_cast %102 : vector<128xf32> to vector<1x128xf32>
      %104 = vector.extract_strided_slice %39 {offsets = [1, 0], sizes = [1, 128], strides = [1, 1]} : vector<8x128xf32> to vector<1x128xf32>
      %105 = arith.addf %103, %104 : vector<1x128xf32>
      %c1_i32_58 = arith.constant 1 : i32
      %106 = arith.addi %13, %c1_i32_58 : i32
      %c0_59 = arith.constant 0 : index
      %107 = arith.index_cast %106 : i32 to index
      %c0_60 = arith.constant 0 : index
      %108 = vector.load %arg10[%c0_59, %107, %c0_60] : memref<1x16x128xf32, #tpu.memory_space<vmem>>, vector<1x1x128xf32>
      %109 = vector.shape_cast %108 : vector<1x1x128xf32> to vector<1x128xf32>
      %110 = vector.shape_cast %105 : vector<1x128xf32> to vector<1x1x128xf32>
      tpu.vector_store %arg10[%c0_59, %107, %c0_60], %110 {strides = array<i32>} : memref<1x16x128xf32, #tpu.memory_space<vmem>>, vector<1x1x128xf32>,
      %c2 = arith.constant 2 : index
      %c0_61 = arith.constant 0 : index
      %c0_62 = arith.constant 0 : index
      %111 = vector.load %arg11[%c2, %c0_61, %c0_62] : memref<8x8x128xf32, #tpu.memory_space<vmem>>, vector<1x8x128xf32>
      %112 = vector.shape_cast %111 : vector<1x8x128xf32> to vector<8x128xf32>
      %113 = arith.mulf %112, %98 : vector<8x128xf32>
      %c2_63 = arith.constant 2 : index
      %c0_64 = arith.constant 0 : index
      %c0_65 = arith.constant 0 : index
      %114 = vector.load %arg12[%c2_63, %c0_64, %c0_65] : memref<8x8x128xf32, #tpu.memory_space<vmem>>, vector<1x8x128xf32>
      %115 = vector.shape_cast %114 : vector<1x8x128xf32> to vector<8x128xf32>
      %116 = arith.addf %113, %115 : vector<8x128xf32>
      %c2_66 = arith.constant 2 : index
      %c0_67 = arith.constant 0 : index
      %c0_68 = arith.constant 0 : index
      %117 = vector.load %arg13[%c2_66, %c0_67, %c0_68] : memref<8x8x128xf32, #tpu.memory_space<vmem>>, vector<1x8x128xf32>
      %118 = vector.shape_cast %117 : vector<1x8x128xf32> to vector<8x128xf32>
      %119 = arith.mulf %116, %118 : vector<8x128xf32>
      %cst_69 = arith.constant dense<0.000000e+00> : vector<128xf32>
      %120 = vector.multi_reduction <add>, %119, %cst_69 [0] : vector<8x128xf32> to vector<128xf32>
      %121 = vector.shape_cast %120 : vector<128xf32> to vector<1x128xf32>
      %122 = vector.extract_strided_slice %39 {offsets = [2, 0], sizes = [1, 128], strides = [1, 1]} : vector<8x128xf32> to vector<1x128xf32>
      %123 = arith.addf %121, %122 : vector<1x128xf32>
      %c2_i32_70 = arith.constant 2 : i32
      %124 = arith.addi %13, %c2_i32_70 : i32
      %c0_71 = arith.constant 0 : index
      %125 = arith.index_cast %124 : i32 to index
      %c0_72 = arith.constant 0 : index
      %126 = vector.load %arg10[%c0_71, %125, %c0_72] : memref<1x16x128xf32, #tpu.memory_space<vmem>>, vector<1x1x128xf32>
      %127 = vector.shape_cast %126 : vector<1x1x128xf32> to vector<1x128xf32>
      %128 = vector.shape_cast %123 : vector<1x128xf32> to vector<1x1x128xf32>
      tpu.vector_store %arg10[%c0_71, %125, %c0_72], %128 {strides = array<i32>} : memref<1x16x128xf32, #tpu.memory_space<vmem>>, vector<1x1x128xf32>,
      %c3 = arith.constant 3 : index
      %c0_73 = arith.constant 0 : index
      %c0_74 = arith.constant 0 : index
      %129 = vector.load %arg11[%c3, %c0_73, %c0_74] : memref<8x8x128xf32, #tpu.memory_space<vmem>>, vector<1x8x128xf32>
      %130 = vector.shape_cast %129 : vector<1x8x128xf32> to vector<8x128xf32>
      %131 = arith.mulf %130, %116 : vector<8x128xf32>
      %c3_75 = arith.constant 3 : index
      %c0_76 = arith.constant 0 : index
      %c0_77 = arith.constant 0 : index
      %132 = vector.load %arg12[%c3_75, %c0_76, %c0_77] : memref<8x8x128xf32, #tpu.memory_space<vmem>>, vector<1x8x128xf32>
      %133 = vector.shape_cast %132 : vector<1x8x128xf32> to vector<8x128xf32>
      %134 = arith.addf %131, %133 : vector<8x128xf32>
      %c3_78 = arith.constant 3 : index
      %c0_79 = arith.constant 0 : index
      %c0_80 = arith.constant 0 : index
      %135 = vector.load %arg13[%c3_78, %c0_79, %c0_80] : memref<8x8x128xf32, #tpu.memory_space<vmem>>, vector<1x8x128xf32>
      %136 = vector.shape_cast %135 : vector<1x8x128xf32> to vector<8x128xf32>
      %137 = arith.mulf %134, %136 : vector<8x128xf32>
      %cst_81 = arith.constant dense<0.000000e+00> : vector<128xf32>
      %138 = vector.multi_reduction <add>, %137, %cst_81 [0] : vector<8x128xf32> to vector<128xf32>
      %139 = vector.shape_cast %138 : vector<128xf32> to vector<1x128xf32>
      %140 = vector.extract_strided_slice %39 {offsets = [3, 0], sizes = [1, 128], strides = [1, 1]} : vector<8x128xf32> to vector<1x128xf32>
      %141 = arith.addf %139, %140 : vector<1x128xf32>
      %c3_i32 = arith.constant 3 : i32
      %142 = arith.addi %13, %c3_i32 : i32
      %c0_82 = arith.constant 0 : index
      %143 = arith.index_cast %142 : i32 to index
      %c0_83 = arith.constant 0 : index
      %144 = vector.load %arg10[%c0_82, %143, %c0_83] : memref<1x16x128xf32, #tpu.memory_space<vmem>>, vector<1x1x128xf32>
      %145 = vector.shape_cast %144 : vector<1x1x128xf32> to vector<1x128xf32>
      %146 = vector.shape_cast %141 : vector<1x128xf32> to vector<1x1x128xf32>
      tpu.vector_store %arg10[%c0_82, %143, %c0_83], %146 {strides = array<i32>} : memref<1x16x128xf32, #tpu.memory_space<vmem>>, vector<1x1x128xf32>,
      %c4 = arith.constant 4 : index
      %c0_84 = arith.constant 0 : index
      %c0_85 = arith.constant 0 : index
      %147 = vector.load %arg11[%c4, %c0_84, %c0_85] : memref<8x8x128xf32, #tpu.memory_space<vmem>>, vector<1x8x128xf32>
      %148 = vector.shape_cast %147 : vector<1x8x128xf32> to vector<8x128xf32>
      %149 = arith.mulf %148, %134 : vector<8x128xf32>
      %c4_86 = arith.constant 4 : index
      %c0_87 = arith.constant 0 : index
      %c0_88 = arith.constant 0 : index
      %150 = vector.load %arg12[%c4_86, %c0_87, %c0_88] : memref<8x8x128xf32, #tpu.memory_space<vmem>>, vector<1x8x128xf32>
      %151 = vector.shape_cast %150 : vector<1x8x128xf32> to vector<8x128xf32>
      %152 = arith.addf %149, %151 : vector<8x128xf32>
      %c4_89 = arith.constant 4 : index
      %c0_90 = arith.constant 0 : index
      %c0_91 = arith.constant 0 : index
      %153 = vector.load %arg13[%c4_89, %c0_90, %c0_91] : memref<8x8x128xf32, #tpu.memory_space<vmem>>, vector<1x8x128xf32>
      %154 = vector.shape_cast %153 : vector<1x8x128xf32> to vector<8x128xf32>
      %155 = arith.mulf %152, %154 : vector<8x128xf32>
      %cst_92 = arith.constant dense<0.000000e+00> : vector<128xf32>
      %156 = vector.multi_reduction <add>, %155, %cst_92 [0] : vector<8x128xf32> to vector<128xf32>
      %157 = vector.shape_cast %156 : vector<128xf32> to vector<1x128xf32>
      %158 = vector.extract_strided_slice %39 {offsets = [4, 0], sizes = [1, 128], strides = [1, 1]} : vector<8x128xf32> to vector<1x128xf32>
      %159 = arith.addf %157, %158 : vector<1x128xf32>
      %c4_i32 = arith.constant 4 : i32
      %160 = arith.addi %13, %c4_i32 : i32
      %c0_93 = arith.constant 0 : index
      %161 = arith.index_cast %160 : i32 to index
      %c0_94 = arith.constant 0 : index
      %162 = vector.load %arg10[%c0_93, %161, %c0_94] : memref<1x16x128xf32, #tpu.memory_space<vmem>>, vector<1x1x128xf32>
      %163 = vector.shape_cast %162 : vector<1x1x128xf32> to vector<1x128xf32>
      %164 = vector.shape_cast %159 : vector<1x128xf32> to vector<1x1x128xf32>
      tpu.vector_store %arg10[%c0_93, %161, %c0_94], %164 {strides = array<i32>} : memref<1x16x128xf32, #tpu.memory_space<vmem>>, vector<1x1x128xf32>,
      %c5 = arith.constant 5 : index
      %c0_95 = arith.constant 0 : index
      %c0_96 = arith.constant 0 : index
      %165 = vector.load %arg11[%c5, %c0_95, %c0_96] : memref<8x8x128xf32, #tpu.memory_space<vmem>>, vector<1x8x128xf32>
      %166 = vector.shape_cast %165 : vector<1x8x128xf32> to vector<8x128xf32>
      %167 = arith.mulf %166, %152 : vector<8x128xf32>
      %c5_97 = arith.constant 5 : index
      %c0_98 = arith.constant 0 : index
      %c0_99 = arith.constant 0 : index
      %168 = vector.load %arg12[%c5_97, %c0_98, %c0_99] : memref<8x8x128xf32, #tpu.memory_space<vmem>>, vector<1x8x128xf32>
      %169 = vector.shape_cast %168 : vector<1x8x128xf32> to vector<8x128xf32>
      %170 = arith.addf %167, %169 : vector<8x128xf32>
      %c5_100 = arith.constant 5 : index
      %c0_101 = arith.constant 0 : index
      %c0_102 = arith.constant 0 : index
      %171 = vector.load %arg13[%c5_100, %c0_101, %c0_102] : memref<8x8x128xf32, #tpu.memory_space<vmem>>, vector<1x8x128xf32>
      %172 = vector.shape_cast %171 : vector<1x8x128xf32> to vector<8x128xf32>
      %173 = arith.mulf %170, %172 : vector<8x128xf32>
      %cst_103 = arith.constant dense<0.000000e+00> : vector<128xf32>
      %174 = vector.multi_reduction <add>, %173, %cst_103 [0] : vector<8x128xf32> to vector<128xf32>
      %175 = vector.shape_cast %174 : vector<128xf32> to vector<1x128xf32>
      %176 = vector.extract_strided_slice %39 {offsets = [5, 0], sizes = [1, 128], strides = [1, 1]} : vector<8x128xf32> to vector<1x128xf32>
      %177 = arith.addf %175, %176 : vector<1x128xf32>
      %c5_i32 = arith.constant 5 : i32
      %178 = arith.addi %13, %c5_i32 : i32
      %c0_104 = arith.constant 0 : index
      %179 = arith.index_cast %178 : i32 to index
      %c0_105 = arith.constant 0 : index
      %180 = vector.load %arg10[%c0_104, %179, %c0_105] : memref<1x16x128xf32, #tpu.memory_space<vmem>>, vector<1x1x128xf32>
      %181 = vector.shape_cast %180 : vector<1x1x128xf32> to vector<1x128xf32>
      %182 = vector.shape_cast %177 : vector<1x128xf32> to vector<1x1x128xf32>
      tpu.vector_store %arg10[%c0_104, %179, %c0_105], %182 {strides = array<i32>} : memref<1x16x128xf32, #tpu.memory_space<vmem>>, vector<1x1x128xf32>,
      %c6 = arith.constant 6 : index
      %c0_106 = arith.constant 0 : index
      %c0_107 = arith.constant 0 : index
      %183 = vector.load %arg11[%c6, %c0_106, %c0_107] : memref<8x8x128xf32, #tpu.memory_space<vmem>>, vector<1x8x128xf32>
      %184 = vector.shape_cast %183 : vector<1x8x128xf32> to vector<8x128xf32>
      %185 = arith.mulf %184, %170 : vector<8x128xf32>
      %c6_108 = arith.constant 6 : index
      %c0_109 = arith.constant 0 : index
      %c0_110 = arith.constant 0 : index
      %186 = vector.load %arg12[%c6_108, %c0_109, %c0_110] : memref<8x8x128xf32, #tpu.memory_space<vmem>>, vector<1x8x128xf32>
      %187 = vector.shape_cast %186 : vector<1x8x128xf32> to vector<8x128xf32>
      %188 = arith.addf %185, %187 : vector<8x128xf32>
      %c6_111 = arith.constant 6 : index
      %c0_112 = arith.constant 0 : index
      %c0_113 = arith.constant 0 : index
      %189 = vector.load %arg13[%c6_111, %c0_112, %c0_113] : memref<8x8x128xf32, #tpu.memory_space<vmem>>, vector<1x8x128xf32>
      %190 = vector.shape_cast %189 : vector<1x8x128xf32> to vector<8x128xf32>
      %191 = arith.mulf %188, %190 : vector<8x128xf32>
      %cst_114 = arith.constant dense<0.000000e+00> : vector<128xf32>
      %192 = vector.multi_reduction <add>, %191, %cst_114 [0] : vector<8x128xf32> to vector<128xf32>
      %193 = vector.shape_cast %192 : vector<128xf32> to vector<1x128xf32>
      %194 = vector.extract_strided_slice %39 {offsets = [6, 0], sizes = [1, 128], strides = [1, 1]} : vector<8x128xf32> to vector<1x128xf32>
      %195 = arith.addf %193, %194 : vector<1x128xf32>
      %c6_i32 = arith.constant 6 : i32
      %196 = arith.addi %13, %c6_i32 : i32
      %c0_115 = arith.constant 0 : index
      %197 = arith.index_cast %196 : i32 to index
      %c0_116 = arith.constant 0 : index
      %198 = vector.load %arg10[%c0_115, %197, %c0_116] : memref<1x16x128xf32, #tpu.memory_space<vmem>>, vector<1x1x128xf32>
      %199 = vector.shape_cast %198 : vector<1x1x128xf32> to vector<1x128xf32>
      %200 = vector.shape_cast %195 : vector<1x128xf32> to vector<1x1x128xf32>
      tpu.vector_store %arg10[%c0_115, %197, %c0_116], %200 {strides = array<i32>} : memref<1x16x128xf32, #tpu.memory_space<vmem>>, vector<1x1x128xf32>,
      %c7 = arith.constant 7 : index
      %c0_117 = arith.constant 0 : index
      %c0_118 = arith.constant 0 : index
      %201 = vector.load %arg11[%c7, %c0_117, %c0_118] : memref<8x8x128xf32, #tpu.memory_space<vmem>>, vector<1x8x128xf32>
      %202 = vector.shape_cast %201 : vector<1x8x128xf32> to vector<8x128xf32>
      %203 = arith.mulf %202, %188 : vector<8x128xf32>
      %c7_119 = arith.constant 7 : index
      %c0_120 = arith.constant 0 : index
      %c0_121 = arith.constant 0 : index
      %204 = vector.load %arg12[%c7_119, %c0_120, %c0_121] : memref<8x8x128xf32, #tpu.memory_space<vmem>>, vector<1x8x128xf32>
      %205 = vector.shape_cast %204 : vector<1x8x128xf32> to vector<8x128xf32>
      %206 = arith.addf %203, %205 : vector<8x128xf32>
      %c7_122 = arith.constant 7 : index
      %c0_123 = arith.constant 0 : index
      %c0_124 = arith.constant 0 : index
      %207 = vector.load %arg13[%c7_122, %c0_123, %c0_124] : memref<8x8x128xf32, #tpu.memory_space<vmem>>, vector<1x8x128xf32>
      %208 = vector.shape_cast %207 : vector<1x8x128xf32> to vector<8x128xf32>
      %209 = arith.mulf %206, %208 : vector<8x128xf32>
      %cst_125 = arith.constant dense<0.000000e+00> : vector<128xf32>
      %210 = vector.multi_reduction <add>, %209, %cst_125 [0] : vector<8x128xf32> to vector<128xf32>
      %211 = vector.shape_cast %210 : vector<128xf32> to vector<1x128xf32>
      %212 = vector.extract_strided_slice %39 {offsets = [7, 0], sizes = [1, 128], strides = [1, 1]} : vector<8x128xf32> to vector<1x128xf32>
      %213 = arith.addf %211, %212 : vector<1x128xf32>
      %c7_i32 = arith.constant 7 : i32
      %214 = arith.addi %13, %c7_i32 : i32
      %c0_126 = arith.constant 0 : index
      %215 = arith.index_cast %214 : i32 to index
      %c0_127 = arith.constant 0 : index
      %216 = vector.load %arg10[%c0_126, %215, %c0_127] : memref<1x16x128xf32, #tpu.memory_space<vmem>>, vector<1x1x128xf32>
      %217 = vector.shape_cast %216 : vector<1x1x128xf32> to vector<1x128xf32>
      %218 = vector.shape_cast %213 : vector<1x128xf32> to vector<1x1x128xf32>
      tpu.vector_store %arg10[%c0_126, %215, %c0_127], %218 {strides = array<i32>} : memref<1x16x128xf32, #tpu.memory_space<vmem>>, vector<1x1x128xf32>,
      scf.yield %206 : vector<8x128xf32>
    }
    %c2_i32_11 = arith.constant 2 : i32
    %c0_12 = arith.constant 0 : index
    %c0_13 = arith.constant 0 : index
    %11 = vector.load %arg14[%c0_12, %c0_13] : memref<8x128xf32, #tpu.memory_space<vmem>>, vector<8x128xf32>
    tpu.vector_store %arg14[%c0_12, %c0_13], %10 {strides = array<i32>} : memref<8x128xf32, #tpu.memory_space<vmem>>, vector<8x128xf32>,
    return
  }
  func.func @transform_0(%arg0: i32, %arg1: i32) -> (i32, i32, i32) {
    %c0_i32 = arith.constant 0 : i32
    %c0_i32_0 = arith.constant 0 : i32
    return %arg0, %arg1, %c0_i32 : i32, i32, i32
  }
  func.func @transform_1(%arg0: i32, %arg1: i32) -> (i32, i32, i32) {
    %c0_i32 = arith.constant 0 : i32
    %c0_i32_0 = arith.constant 0 : i32
    return %arg0, %arg1, %c0_i32 : i32, i32, i32
  }
  func.func @transform_2(%arg0: i32, %arg1: i32) -> (i32, i32) {
    %c0_i32 = arith.constant 0 : i32
    %c0_i32_0 = arith.constant 0 : i32
    %c0_i32_1 = arith.constant 0 : i32
    return %c0_i32, %c0_i32_0 : i32, i32
  }
  func.func @transform_3(%arg0: i32, %arg1: i32) -> (i32, i32, i32) {
    %c0_i32 = arith.constant 0 : i32
    %c0_i32_0 = arith.constant 0 : i32
    return %arg0, %arg1, %c0_i32 : i32, i32, i32
  }
  func.func @transform_4(%arg0: i32, %arg1: i32) -> (i32, i32, i32) {
    %c0_i32 = arith.constant 0 : i32
    %c0_i32_0 = arith.constant 0 : i32
    return %arg0, %arg1, %c0_i32 : i32, i32, i32
  }
  func.func @transform_5(%arg0: i32, %arg1: i32) -> (i32, i32) {
    %c0_i32 = arith.constant 0 : i32
    %c0_i32_0 = arith.constant 0 : i32
    %c0_i32_1 = arith.constant 0 : i32
    return %c0_i32, %c0_i32_0 : i32, i32
  }
  func.func @transform_6(%arg0: i32, %arg1: i32) -> (i32, i32) {
    %c0_i32 = arith.constant 0 : i32
    %c0_i32_0 = arith.constant 0 : i32
    %c0_i32_1 = arith.constant 0 : i32
    return %c0_i32, %c0_i32_0 : i32, i32
  }
  func.func @transform_7(%arg0: i32, %arg1: i32) -> (i32, i32) {
    %c0_i32 = arith.constant 0 : i32
    %c0_i32_0 = arith.constant 0 : i32
    %c0_i32_1 = arith.constant 0 : i32
    return %c0_i32, %c0_i32_0 : i32, i32
  }
  func.func @transform_8(%arg0: i32, %arg1: i32) -> (i32, i32, i32) {
    %c0_i32 = arith.constant 0 : i32
    %c0_i32_0 = arith.constant 0 : i32
    return %arg0, %arg1, %c0_i32 : i32, i32, i32
  }
}

</mosaic_0001>

<bundles_post_ra>
// kernel: tpu_custom_call.1
= control target key start
LH: loop header
LB: loop body
LE: loop exit
PB: predicated region body
PF: predicated region fallthrough
CT: control target
= control target key end

     0   :  { %s2175_s0 = inlined_call_operand.vmem [shape: f32[2,64,128], index: 0, kind: input, shape index: {}]   ;;  %s2176_s1 = inlined_call_operand.vmem [shape: f32[2,64,128], index: 1, kind: input, shape index: {}]   ;;  %s2177_s2 = inlined_call_operand.vmem [shape: f32[8,128], index: 2, kind: input, shape index: {}]   ;;  %s2178_s3 = inlined_call_operand.vmem [shape: f32[2,512,4], index: 3, kind: input, shape index: {}]   ;;  %s2179_s4 = inlined_call_operand.vmem [shape: f32[2,512,4], index: 4, kind: input, shape index: {}]   ;;  %s2180_s5 = inlined_call_operand.vmem [shape: f32[4,128], index: 5, kind: input, shape index: {}]   ;;  %s2181_s6 = inlined_call_operand.vmem [shape: f32[1,128], index: 6, kind: input, shape index: {}]   ;;  %s2182_s7 = inlined_call_operand.vmem [shape: f32[1,128], index: 7, kind: input, shape index: {}]   ;;  %s2183_s8 = inlined_call_operand.hbm [shape: f32[2,64,128], index: 8, kind: output, shape index: {}]  }
   0x1   :  { %2195 = sst [smem:[#allocation18_spill]] %s2183_s8 }
   0x2   :  { %13 = vsyncpa [#allocation7], 0 }
   0x3   :  { %15 = vsyncpa [#allocation7 + $0x1], 0  ;;  %s1850_s27 = smov 0   ;;  %s1852_s28 = smov 0  }
   0x4   :  { %s1854_s29 = smov 0   ;;  %s1856_s30 = smov 0  }
   0x5   :  { %s1858_s9 = smov 0   ;;  %s1860_s10 = smov 0  }
   0x6   :  { %s1862_s11 = smov 0   ;;  %s1864_s12 = smov 0  }
   0x7 LB: > { %2196 = sst [smem:[#allocation9_spill]] %s1762_s27  ;;  %s1456_s13 = sadd.s32 4294967295, %s1790_s12   ;;  %s1790_s12 = sphi %s1864_s12, %s21_s12   ;;  %s1786_s11 = sphi %s1862_s11, %s2218_s11   ;;  %s1782_s10 = sphi %s1860_s10, %s2217_s10   ;;  %s1778_s9 = sphi %s1858_s9, %s2216_s9   ;;  %s1774_s30 = sphi %s1856_s30, %s2215_s30   ;;  %s1770_s29 = sphi %s1854_s29, %s2214_s29   ;;  %s1766_s28 = sphi %s1852_s28, %s2220_s28   ;;  %s1762_s27 = sphi %s1850_s27, %s2219_s27  }
   0x8   : > { %2197 = sst [smem:[#allocation10_spill]] %s1770_s29  ;;  %s1457_s14 = sadd.s32 4294967294, %s1790_s12  }
   0x9   : > { %2198 = sst [smem:[#allocation11_spill]] %s1782_s10  ;;  %s30_s15 = sadd.s32 1, %s1782_s10 }
   0xa   : > { %2199 = sst [smem:[#allocation12_spill]] %s1786_s11  ;;  %p31_p0 = scmp.ge.s32.totalorder %s30_s15, 4 }
   0xb   : > { %2200 = sst [smem:[#allocation13_spill]] %s1790_s12  ;;  %s33_s16 = sadd.s32 1, %s1786_s11 }
   0xc   : > { %p248_p1 = scmp.ne.s32.totalorder %s1770_s29, %s1766_s28  ;;  %p249_p2 = scmp.eq.s32.totalorder %s1456_s13, 7 }
   0xd   : > { %s2222_s15 = smov (%p31_p0, %s30_s15), 0  ;;  %s2224_s16 = smov (!%p31_p0, %s33_s16), %s1786_s11 }
   0xe   : > { %2201 = sst [smem:[#allocation14_spill]] %s2222_s15  ;;  %s234_s17 = ssub.s32 %s1782_s10, %s2222_s15 }
   0xf   : > { %p1901_p3 = por %p249_p2, %p248_p1  ;;  %p35_p4 = scmp.ge.s32.totalorder %s2224_s16, 2 }
  0x10   : > { %p254_p5 = scmp.ne.s32.totalorder %s1766_s28, %s1762_s27  ;;  %p255_p6 = scmp.eq.s32.totalorder %s1457_s14, 7 }
  0x11   : > { %p1460_p7 = scmp.ge.s32.totalorder %s1790_s12, 1  ;;  %s2226_s16 = smov (%p35_p4, %s2224_s16), 0 }
  0x12   : > { %2203 = sst [smem:[#allocation15_spill]] %s2226_s16  ;;  %p1910_p8 = por %p255_p6, %p254_p5 }
  0x13   : > { %p337_p9 = scmp.lt.s32.totalorder %s1790_s12, 9  ;;  %s233_s20 = ssub.s32 %s1786_s11, %s2226_s16 }
  0x14   : > { %s2204_s19 = scalar_select %p1910_p8, 1, 0 }
  0x15   : > { %s238_s21 = sadd.s32 1, %s1770_s29  ;;  %s235_s22 = sor.u32 %s234_s17, %s233_s20 }
  0x16   : > { %2205 = sst [smem:[#allocation16_spill]] %s2204_s19  ;;  %p338_p10 = pnand %p1460_p7, %p337_p9 }
  0x17   : > { %p236_p11 = scmp.eq.s32.totalorder %s235_s22, 0  ;;  %s2189_s24 = sand.u32 (!%p338_p10), 1, %s1766_s28  }
  0x18   : > { %341 = sbr.rel (%p338_p10) target bundleno = 324 (0x144), region = 52  ;;  %s1923_s25 = sshll.u32 (!%p338_p10), %s1774_s30, 1 }
  0x19   : > { %s1919_s23 = scalar_select %p236_p11, %s1770_s29, %s238_s21  }
  0x1a   : > { %s1927_s26 = sshll.u32 (!%p338_p10), %s2189_s24, 4  ;;  %p403_p12 = scmp.lt.s32.totalorder (!%p338_p10), %s1778_s9, 1 }
  0x1b   : > { %2206 = sst [smem:[#allocation17_spill]] %s1919_s23  ;;  %p405_p13 = scmp.lt.s32.totalorder (!%p338_p10), %s1923_s25, 7 }
  0x1c   : > { %s1468_s20 = sshll.u32 (!%p338_p10), %s1774_s30, 4  ;;  %s401_s11 = scalar_lea.vmem (!%p338_p10), [#allocation6], %s1927_s26 }
  0x1d   : > { %s404_s13 = scalar_select %p403_p12, %s1778_s9, 1 }
  0x1e   : > { %s406_s14 = scalar_select %p405_p13, %s1923_s25, 7 }
  0x1f   : > { %s1463_s17 = sshll.u32 %s404_s13, 3  ;;  %p425_p0 = scmp.lt.s32.totalorder %s1468_s20, 63 }
  0x20   : > { %s408_s21 = sadd.s32 %s1463_s17, %s406_s14  ;;  %s1469_s16 = sshll.u32 %s404_s13, 6 }
  0x21   : > { %s1464_s22 = sshll.u32 %s408_s21, 3  ;;  %s2228_s20 = smov (!%p425_p0, %s1468_s20), 63 }
  0x22   : > { %s1937_s10 = scalar_lea.vmem %s2175_s0, %s1464_s22  ;;  %s1942_s24 = scalar_lea.vmem %s2176_s1, %s1464_s22 }
  0x23   : > { %s428_s19 = sadd.s32 %s1469_s16, %s2228_s20  ;;  %p1474_p1 = scmp.ne.s32.totalorder %s1774_s30, 0 }
  0x24   : > { %s1470_s27 = sshll.u32 %s428_s19, 3 }
  0x25   : > { %s1947_s14 = scalar_lea.vmem %s2178_s3, %s1470_s27  ;;  %s1952_s21 = scalar_lea.vmem %s2179_s4, %s1470_s27 }
  0x26   : > { %447 = sbr.rel (%p1474_p1) target bundleno = 45 (0x2d), region = 56 }
  0x2b   : > { %v1800_v0 = vmov 0.0  }
  0x2c   : > { %448 = vst [vmem:[#allocation5] sm:$0xff] %v1800_v0 }
  0x2d PF: > { %v1959_v1 = vld [vmem:[%s2177_s2] sm:$0xff]  ;;  %s1978_s23 = smov 0  }
  0x2e   : > { %v1964_v2 = vld [vmem:[%s2181_s6] ss:$0 sm:$0xff] }
  0x2f   : > { %v1969_v3 = vld [vmem:[%s2182_s7] ss:$0 sm:$0xff] }
  0x30   : > { %v452_v4 = vld [vmem:[%s2180_s5] sm:$0xf] }
  0x31   : > { %v1974_v6 = vpack.c.bf16 %v452_v4, %v452_v4 }
  0x33   : > { %v454_v5 = vld [vmem:[#allocation5] sm:$0xff]  }
  0x34 LB: >> { %vm668_vm0 = vcmask 1041408   ;;  %s1476_s20 = sshll.u32 %s1798_s23, 6  ;;  %vm655_vm1 = vcmask 31744   ;;  %s2021_s13 = sshll.u32 %s1798_s23, 3  ;;  %s1798_s23 = sphi %s1978_s23, %s460_s23   ;;  %v1794_v5 = vphi %v454_v5, %v2207_v5  }
  0x35   : >> { %1576 = vmatprep.subr.msk.bf16.mxu1 %vm668_vm0, %v1974_v6  ;;  %v670_v7 = vsel %vm668_vm0, %v1974_v6, 0  ;;  %1575 = vmatprep.subr.msk.bf16.mxu0 %vm668_vm0, %v1974_v6  ;;  %s622_s22 = scalar_lea.vmem %s1947_s14, %s1476_s20  ;;  %s1994_s17 = scalar_lea.vmem %s1952_s21, %s1476_s20 }
  0x36   : >> { %1546 = vmatpush3.bf16.msra.mxu1 %v670_v7  ;;  %1536 = vmatpush3.bf16.msra.mxu0 %v670_v7  ;;  %v623_v8 = vld [vmem:[%s622_s22] sm:$0xff]  ;;  %v624_v9 = vld [vmem:[%s622_s22 + $0x8] sm:$0xff]  ;;  %v625_v10 = vld [vmem:[%s622_s22 + $0x10] sm:$0xff]  ;;  %s466_s29 = scalar_lea.vmem %s1942_s24, %s2021_s13  ;;  %s464_s15 = scalar_lea.vmem %s1937_s10, %s2021_s13 }
  0x37   : >> { %1577 = vmatprep.subr.msk.bf16.mxu0 %vm668_vm0, %v1974_v6  ;;  %1578 = vmatprep.subr.msk.bf16.mxu1 %vm668_vm0, %v1974_v6  ;;  %v631_v11 = vpack.c.bf16 %v624_v9, %v623_v8  ;;  %v626_v12 = vld [vmem:[%s622_s22 + $0x18] sm:$0xff]  ;;  %v627_v13 = vld [vmem:[%s622_s22 + $0x20] sm:$0xff]  ;;  %v628_v14 = vld [vmem:[%s622_s22 + $0x28] sm:$0xff]  ;;  %s2088_s8 = scalar_lea.vmem %s401_s11, %s2021_s13 [#allocation6]  ;;  %s460_s23 = sadd.s32 1, %s1798_s23  }
  0x38   : >> { %v632_v15 = vpack.c.bf16 %v626_v12, %v625_v10  ;;  %v633_v16 = vpack.c.bf16 %v628_v14, %v627_v13  ;;  %v629_v17 = vld [vmem:[%s622_s22 + $0x30] sm:$0xff]  ;;  %v630_v18 = vld [vmem:[%s622_s22 + $0x38] sm:$0xff]  ;;  %v815_v26 = vld [vmem:[%s1994_s17] sm:$0xff]  ;;  %p457_p2 = scmp.ge.s32.totalorder %s460_s23, 2  }
  0x39   : >> { %1547 = vmatprep.mubr.msk.bf16.mxu1 %vm655_vm1, %v631_v11  ;;  %v635_v19 = vunpack.c.l.bf16 %v631_v11  ;;  %v636_v20 = vunpack.c.h.bf16 %v631_v11  ;;  %v634_v21 = vpack.c.bf16 %v630_v18, %v629_v17  ;;  %v816_v27 = vld [vmem:[%s1994_s17 + $0x8] sm:$0xff]  ;;  %v817_v38 = vld [vmem:[%s1994_s17 + $0x10] sm:$0xff]  ;;  %v818_v39 = vld [vmem:[%s1994_s17 + $0x18] sm:$0xff]  ;;  %s1511_s12 = sshll.u32 (%p457_p2), %s1778_s9, 3  ;;  %s1281_s27 = sshll.u32 (%p457_p2), %s401_s11, 4  ;;  %s2115_s27 = int_to_ptr.vmem [resolvable:$true] %s1281_s27 }
  0x3a   : >> { %1548 = vmatmul.mubr.msk.bf16.vlgmr.msra.gmra.mxu1 %vm655_vm1, %v632_v15  ;;  %v637_v22 = vunpack.c.l.bf16 %v632_v15  ;;  %v638_v23 = vunpack.c.h.bf16 %v632_v15  ;;  %v639_v24 = vunpack.c.l.bf16 %v633_v16  ;;  %v640_v25 = vunpack.c.h.bf16 %v633_v16  ;;  %v819_v42 = vld [vmem:[%s1994_s17 + $0x20] sm:$0xff]  ;;  %v820_v43 = vld [vmem:[%s1994_s17 + $0x28] sm:$0xff]  ;;  %v821_v56 = vld [vmem:[%s1994_s17 + $0x30] sm:$0xff]  ;;  %s1278_s16 = sadd.s32 (%p457_p2), %s1511_s12, %s1923_s25  ;;  %s2208_s22 = sld [smem:[#allocation18_spill]] (%p457_p2) }
  0x3b   : >> { %v643_v28 = vsub.f32 %v623_v8, %v635_v19  ;;  %v644_v29 = vsub.f32 %v624_v9, %v636_v20  ;;  %1566 = vmatpush3.bf16.msra.mxu1 %v670_v7  ;;  %1551 = vmatprep.mubr.msk.bf16.mxu1 %vm655_vm1, %v633_v16  ;;  %v641_v30 = vunpack.c.l.bf16 %v634_v21  ;;  %v642_v31 = vunpack.c.h.bf16 %v634_v21  ;;  %v822_v57 = vld [vmem:[%s1994_s17 + $0x38] sm:$0xff]  ;;  %s1512_s30 = sshll.u32 (%p457_p2), %s1278_s16, 7  ;;  %s2209_s10 = sand.u32 (%p457_p2), 1, %s1766_s28  }
  0x3c   : >> { %v645_v32 = vsub.f32 %v625_v10, %v637_v22  ;;  %v646_v33 = vsub.f32 %v626_v12, %v638_v23  ;;  %v647_v34 = vsub.f32 %v627_v13, %v639_v24  ;;  %v648_v35 = vsub.f32 %v628_v14, %v640_v25  ;;  %v467_v13 = vld [vmem:[%s466_s29] sm:$0xff]  ;;  %s2124_s24 = scalar_lea.sflag (%p457_p2), [#allocation7], %s2209_s10  ;;  %s1690_s14 = scalar_lea.vmem (%p457_p2), %s2115_s27, 256 }
  0x3d   : >> { %v651_v36 = vpack.c.bf16 %v644_v29, %v643_v28  ;;  %v823_v37 = vpack.c.bf16 %v816_v27, %v815_v26  ;;  %v649_v46 = vsub.f32 %v629_v17, %v641_v30  ;;  %v650_v47 = vsub.f32 %v630_v18, %v642_v31  ;;  %p1691_p4 = scmp.ne.s32.totalorder (%p457_p2), %s2115_s27, %s1690_s14  ;;  %s1802_s9 = smov (%p457_p2), [#allocation6]  }
  0x3e   : >> { %v652_v40 = vpack.c.bf16 %v646_v33, %v645_v32  ;;  %v653_v41 = vpack.c.bf16 %v648_v35, %v647_v34  ;;  %v824_v48 = vpack.c.bf16 %v818_v39, %v817_v38  ;;  %v825_v51 = vpack.c.bf16 %v820_v43, %v819_v42  ;;  %s1694_s25 = sshll.u32 (%p457_p2), %s1802_s9, 4  ;;  %s1695_s25 = int_to_ptr.vmem [resolvable:$false] %s1694_s25 }
  0x3f   : >> { %1537 = vmatprep.mubr.msk.bf16.mxu0 %vm655_vm1, %v651_v36  ;;  %v827_v44 = vunpack.c.l.bf16 %v823_v37  ;;  %v828_v45 = vunpack.c.h.bf16 %v823_v37  ;;  %v654_v52 = vpack.c.bf16 %v650_v47, %v649_v46  ;;  %v826_v62 = vpack.c.bf16 %v822_v57, %v821_v56  ;;  %p1692_p5 = pnand (%p457_p2), %p1691_p4, %p1901_p3  ;;  %s1696_s26 = scalar_lea.vmem (%p457_p2), %s1695_s25, 512 }
  0x40   : >> { %1538 = vmatmul.mubr.msk.bf16.vlgmr.msra.gmra.mxu0 %vm655_vm1, %v652_v40  ;;  %v829_v53 = vunpack.c.l.bf16 %v824_v48  ;;  %v830_v54 = vunpack.c.h.bf16 %v824_v48  ;;  %v831_v58 = vunpack.c.l.bf16 %v825_v51  ;;  %v832_v59 = vunpack.c.h.bf16 %v825_v51  ;;  %s2120_s23 = scalar_lea.hbm (%p457_p2), %s2208_s22, %s1512_s30  ;;  %p1697_p7 = scmp.lt.s32.totalorder (%p457_p2), %s2115_s27, %s1695_s25 }
  0x41   : >> { %1556 = vmatpush3.bf16.msra.mxu0 %v670_v7  ;;  %1541 = vmatprep.mubr.msk.bf16.mxu0 %vm655_vm1, %v653_v41  ;;  %v835_v49 = vsub.f32 %v815_v26, %v827_v44  ;;  %v836_v50 = vsub.f32 %v816_v27, %v828_v45  ;;  %v833_v7 = vunpack.c.l.bf16 %v826_v62  ;;  %v834_v8 = vunpack.c.h.bf16 %v826_v62  ;;  %p1693_p6 = pneg (%p457_p2), %p1692_p5  ;;  %p1698_p9 = scmp.lt.s32.totalorder (%p457_p2), %s1696_s26, %s1690_s14 }
  0x42   : >> { %1552 = vmatmul.mubr.msk.bf16.gmra.mxu1 %vm655_vm1, %v634_v21  ;;  %v837_v60 = vsub.f32 %v817_v38, %v829_v53  ;;  %v838_v61 = vsub.f32 %v818_v39, %v830_v54  ;;  %v839_v63 = vsub.f32 %v819_v42, %v831_v58  ;;  %v840_v0 = vsub.f32 %v820_v43, %v832_v59 }
  0x43   : >> { %1567 = vmatprep.mubr.msk.bf16.mxu1 %vm655_vm1, %v823_v37  ;;  %v843_v55 = vpack.c.bf16 %v836_v50, %v835_v49  ;;  %v841_v10 = vsub.f32 %v821_v56, %v833_v7  ;;  %v842_v11 = vsub.f32 %v822_v57, %v834_v8  ;;  %v474_v14 = vadd.f32 %v1969_v3, %v467_v13  ;;  %p1699_p10 = por (%p457_p2), %p1698_p9, %p1697_p7 }
  0x44   : >> { %v844_v4 = vpack.c.bf16 %v838_v61, %v837_v60  ;;  %v845_v9 = vpack.c.bf16 %v840_v0, %v839_v63  ;;  %v1801_v26 = vmov 1966171168   ;;  %v505_v28 = vlaneseq }
  0x45   : >> { %v846_v12 = vpack.c.bf16 %v842_v11, %v841_v10  ;;  %v478_v15 = vand.u32 2147483647, %v474_v14  ;;  %v503_v27 = vunpack.c.l.s4 %v1801_v26  ;;  %v475_v29 = vmax.f32 %v474_v14, 0.0  ;;  %p1700_p11 = pnand (%p457_p2), %p1699_p10, %p1693_p6 }
  0x46   : >> { %v506_v32 = vshrl.u32 %v505_v28, 7  ;;  %vm476_vm3 = vcmp.ne.f32.partialorder %v474_v14, %v474_v14 }
  0x47   : >> { %v479_v16 = vsub.f32 0.0, %v478_v15  ;;  %v504_v31 = vunpack.c.0.s8 %v503_v27 }
  0x48   : >> { %1542 = vmatmul.mubr.msk.bf16.gmra.mxu0 %vm655_vm1, %v654_v52  ;;  %v2030_v38 = vsub.s32 0, %v506_v32 }
  0x49   : >> { %1557 = vmatprep.mubr.msk.bf16.mxu0 %vm655_vm1, %v843_v55  ;;  %v480_v17 = vmul.f32 1.442695, %v479_v16  ;;  %v2026_v34 = vsub.s32 %v504_v31, %v506_v32 }
  0x4a   : >> { %1568 = vmatmul.mubr.msk.bf16.vlgmr.msra.gmra.mxu1 %vm655_vm1, %v824_v48 }
  0x4b   : >> { %1571 = vmatprep.mubr.msk.bf16.mxu1 %vm655_vm1, %v825_v51  ;;  %1670 = vpow2.f32 %v480_v17  ;;  %v2041_v51 = vld [vmem:[%s464_s15] sm:$0xff] }
  0x50   : >> { %1558 = vmatmul.mubr.msk.bf16.vlgmr.msra.gmra.mxu0 %vm655_vm1, %v844_v4 }
  0x51   : >> { %1561 = vmatprep.mubr.msk.bf16.mxu0 %vm655_vm1, %v845_v9 }
  0x52   : >> { %1572 = vmatmul.mubr.msk.bf16.gmra.mxu1 %vm655_vm1, %v826_v62 }
  0x58   : >> { %1562 = vmatmul.mubr.msk.bf16.gmra.mxu0 %vm655_vm1, %v846_v12  ;;  %v1671_v18 = vpop.eup %1670 }
  0x59   : >> { %v482_v19 = vadd.f32 1.0, %v1671_v18  ;;  %v485_v20 = vmul.f32 -0.5, %v1671_v18  ;;  %v488_v23 = vand.u32 2147483647, %v1671_v18 }
  0x5b   : >> { %1672 = vlog2.f32 %v482_v19  ;;  %v486_v21 = vadd.f32 1.0, %v485_v20  ;;  %vm489_vm2 = vcmp.lt.f32.partialorder %v488_v23, 0.0004427343 }
  0x5d   : >> { %v487_v25 = vmul.f32 %v1671_v18, %v486_v21 }
  0x68   : >> { %v1673_v22 = vpop.eup %1672 }
  0x69   : >> { %v484_v24 = vmul.f32 0.6931472, %v1673_v22 }
  0x6b   : >> { %v490_v30 = vsel %vm489_vm2, %v487_v25, %v484_v24 }
  0x6c   : >> { %v491_v33 = vadd.f32 %v490_v30, %v475_v29 }
  0x6e   : >> { %v492_v35 = vsel %vm476_vm3, %v474_v14, %v491_v33 }
  0x6f   : >> { %v508_v36 = vrot.slane %v492_v35, %v2026_v34  ;;  %v501_v44 = vcombine.high %v492_v35, %v492_v35  ;;  %v1001_v57 = vmul.f32 %v492_v35, %v2041_v51 }
  0x71   : >> { %v524_v37 = vrot.slane %v508_v36, %v2026_v34  ;;  %v516_v39 = vcombine.high %v508_v36, %v508_v36  ;;  %v515_v48 = vrot.slane %v501_v44, %v2026_v34  ;;  %v1010_v63 = vrot.slane %v1001_v57, %v2026_v34 }
  0x72   : >> { %v1003_v36 = vcombine.high %v1001_v57, %v1001_v57 }
  0x73   : >> { %v553_v40 = vrot.slane %v524_v37, %v2030_v38  ;;  %v538_v41 = vrot.slane %v516_v39, %v2026_v34  ;;  %v546_v43 = vcombine.high %v524_v37, %v524_v37  ;;  %v517_v52 = vcombine.high %v515_v48, %v515_v48 }
  0x74   : >> { %v531_v54 = vrot.slane %v515_v48, %v2026_v34  ;;  %v1026_v11 = vrot.slane %v1010_v63, %v2026_v34  ;;  %v1018_v12 = vcombine.high %v1010_v63, %v1010_v63 }
  0x75   : >> { %v590_v42 = vmul.f32 %v553_v40, %v1959_v1  ;;  %v557_v45 = vrot.slane %v538_v41, %v2030_v38  ;;  %v561_v47 = vrot.slane %v546_v43, %v2030_v38  ;;  %v548_v49 = vcombine.high %v538_v41, %v538_v41 }
  0x76   : >> { %v545_v58 = vrot.slane %v517_v52, %v2026_v34  ;;  %v569_v60 = vrot.slane %v531_v54, %v2030_v38  ;;  %v547_v7 = vcombine.high %v531_v54, %v531_v54  ;;  %v1055_v17 = vrot.slane %v1026_v11, %v2030_v38 }
  0x77   : >> { %v598_v46 = vmul.f32 1.442695, %v590_v42  ;;  %v591_v50 = vmul.f32 %v557_v45, %v1959_v1  ;;  %v592_v53 = vmul.f32 %v561_v47, %v1959_v1  ;;  %v565_v55 = vrot.slane %v548_v49, %v2030_v38 }
  0x78   : >> { %v573_v4 = vrot.slane %v545_v58, %v2030_v38  ;;  %v594_v8 = vmul.f32 %v569_v60, %v1959_v1  ;;  %v577_v19 = vrot.slane %v547_v7, %v2030_v38  ;;  %v549_v22 = vcombine.high %v545_v58, %v545_v58 }
  0x79   : >> { %1674 = vpow2.f32 %v598_v46  ;;  %v600_v56 = vmul.f32 1.442695, %v591_v50  ;;  %v602_v59 = vmul.f32 1.442695, %v592_v53  ;;  %v593_v61 = vmul.f32 %v565_v55, %v1959_v1 }
  0x7a   : >> { %v595_v16 = vmul.f32 %v573_v4, %v1959_v1  ;;  %v606_v18 = vmul.f32 1.442695, %v594_v8  ;;  %v1040_v25 = vrot.slane %v1018_v12, %v2026_v34  ;;  %v1048_v26 = vcombine.high %v1026_v11, %v1026_v11 }
  0x7b   : >> { %1676 = vpow2.f32 %v600_v56  ;;  %v604_v9 = vmul.f32 1.442695, %v593_v61  ;;  %v596_v32 = vmul.f32 %v577_v19, %v1959_v1  ;;  %v581_v39 = vrot.slane %v549_v22, %v2030_v38 }
  0x7c   : >> { %1678 = vpow2.f32 %v602_v59  ;;  %v608_v29 = vmul.f32 1.442695, %v595_v16  ;;  %v1059_v31 = vrot.slane %v1040_v25, %v2030_v38  ;;  %v1063_v41 = vrot.slane %v1048_v26, %v2030_v38 }
  0x7d   : >> { %1680 = vpow2.f32 %v604_v9  ;;  %v1050_v42 = vcombine.high %v1040_v25, %v1040_v25  ;;  %v610_v49 = vmul.f32 1.442695, %v596_v32  ;;  %v1017_v50 = vrot.slane %v1003_v36, %v2026_v34 }
  0x7e   : >> { %1682 = vpow2.f32 %v606_v18  ;;  %v597_v54 = vmul.f32 %v581_v39, %v1959_v1 }
  0x7f   : >> { %1684 = vpow2.f32 %v608_v29  ;;  %v1067_v56 = vrot.slane %v1050_v42, %v2030_v38  ;;  %v1033_v63 = vrot.slane %v1017_v50, %v2026_v34 }
  0x80   : >> { %1686 = vpow2.f32 %v610_v49  ;;  %v612_v8 = vmul.f32 1.442695, %v597_v54 }
  0x81   : >> { %v1071_v12 = vrot.slane %v1033_v63, %v2030_v38  ;;  %v1049_v25 = vcombine.high %v1033_v63, %v1033_v63 }
  0x82   : >> { %1688 = vpow2.f32 %v612_v8 }
  0x86   : >> { %v1675_v13 = vpop.eup %1674 }
  0x87   : >> { %v1117_v24 = vmul.f32 %v1794_v5, %v1675_v13 }
  0x88   : >> { %v1677_v33 = vpop.eup %1676 }
  0x89   : >> { %v1679_v45 = vpop.eup %1678 }
  0xfa   : >> { %v1549_v62 = vpop.f32.mrf.mxu1 }
  0xfc   : >> { %v783_v0 = vpop.f32.mrf.mxu1 }
  0xfe   : >> { %v1550_v10 = vpop.f32.mrf.mxu1 }
 0x100   : >> { %v1539_v14 = vpop.f32.mrf.mxu0  ;;  %v786_v15 = vpop.f32.mrf.mxu1 }
 0x101   : >> { %v792_v46 = vadd.f32 %v1549_v62, %v1539_v14  ;;  %v1681_v62 = vpop.eup %1680 }
 0x102   : >> { %v706_v20 = vpop.f32.mrf.mxu0  ;;  %v2057_v21 = vpop.f32.mrf.mxu1 }
 0x103   : >> { %v784_v23 = vadd.f32 %v783_v0, %v706_v20  ;;  %v1094_v59 = vmul.f32 %v1063_v41, %v792_v46  ;;  %v1019_v0 = vcombine.high %v1017_v50, %v1017_v50  ;;  %v1683_v18 = vpop.eup %1682 }
 0x104   : >> { %v1540_v27 = vpop.f32.mrf.mxu0  ;;  %v799_v28 = vpop.f32.mrf.mxu1 }
 0x105   : >> { %v1092_v30 = vmul.f32 %v1055_v17, %v784_v23  ;;  %v795_v60 = vadd.f32 %v1550_v10, %v1540_v27  ;;  %v1047_v10 = vrot.slane %v1019_v0, %v2026_v34 }
 0x106   : >> { %v709_v35 = vpop.f32.mrf.mxu0  ;;  %v2063_v37 = vpop.f32.mrf.mxu1 }
 0x107   : >> { %v1119_v5 = vadd.f32 %v1117_v24, %v1092_v30  ;;  %v787_v40 = vadd.f32 %v786_v15, %v709_v35  ;;  %v1095_v15 = vmul.f32 %v1067_v56, %v795_v60  ;;  %v1685_v30 = vpop.eup %1684  ;;  %v1051_v36 = vcombine.high %v1047_v10, %v1047_v10 }
 0x108   : >> { %v1543_v43 = vpop.f32.mrf.mxu0  ;;  %v802_v44 = vpop.f32.mrf.mxu1  ;;  %v2080_v56 = vmul.f32 %v1964_v2, %v2041_v51 }
 0x109   : >> { %v1093_v47 = vmul.f32 %v1059_v31, %v787_v40  ;;  %v1133_v48 = vmul.f32 %v1677_v33, %v1119_v5  ;;  %v808_v46 = vadd.f32 %v2057_v21, %v1543_v43 }
 0x10a   : >> { %v722_v52 = vpop.f32.mrf.mxu0  ;;  %v1569_v53 = vpop.f32.mrf.mxu1 }
 0x10b   : >> { %v1136_v55 = vadd.f32 %v1133_v48, %v1093_v47  ;;  %v800_v11 = vadd.f32 %v799_v28, %v722_v52  ;;  %v1075_v28 = vrot.slane %v1047_v10, %v2030_v38  ;;  %v1079_v47 = vrot.slane %v1049_v25, %v2030_v38 }
 0x10c   : >> { %v2070_v57 = vpop.f32.mrf.mxu0  ;;  %v970_v58 = vpop.f32.mrf.mxu1 }
 0x10d   : >> { %v1152_v61 = vmul.f32 %v1679_v45, %v1136_v55  ;;  %v1096_v26 = vmul.f32 %v1071_v12, %v800_v11  ;;  %v1098_v0 = vmul.f32 %v1079_v47, %v808_v46 }
 0x10e   : >> { %v725_v4 = vpop.f32.mrf.mxu0  ;;  %v1570_v7 = vpop.f32.mrf.mxu1 }
 0x10f   : >> { %v1155_v9 = vadd.f32 %v1152_v61, %v1094_v59  ;;  %v803_v27 = vadd.f32 %v802_v44, %v725_v4  ;;  %v811_v4 = vadd.f32 %v2063_v37, %v2070_v57 }
 0x110   : >> { %v1559_v13 = vpop.f32.mrf.mxu0  ;;  %v973_v14 = vpop.f32.mrf.mxu1 }
 0x111   : >> { %v1171_v16 = vmul.f32 %v1681_v62, %v1155_v9  ;;  %v979_v17 = vadd.f32 %v1569_v53, %v1559_v13  ;;  %v1097_v44 = vmul.f32 %v1075_v28, %v803_v27 }
 0x112   : >> { %v893_v19 = vpop.f32.mrf.mxu0  ;;  %v1573_v24 = vpop.f32.mrf.mxu1 }
 0x113   : >> { %v1174_v20 = vadd.f32 %v1171_v16, %v1095_v15  ;;  %v1158_v22 = vmul.f32 %v1155_v9, %v979_v17  ;;  %v971_v23 = vadd.f32 %v970_v58, %v893_v19  ;;  %v1083_v58 = vrot.slane %v1051_v36, %v2030_v38 }
 0x114   : >> { %v1560_v29 = vpop.f32.mrf.mxu0  ;;  %v986_v45 = vpop.f32.mrf.mxu1 }
 0x115   : >> { %v1190_v31 = vmul.f32 %v1683_v18, %v1174_v20  ;;  %v1159_v32 = vrot.slane %v1158_v22, 4  ;;  %v1121_v33 = vmul.f32 %v1119_v5, %v971_v23  ;;  %v982_v35 = vadd.f32 %v1570_v7, %v1560_v29  ;;  %v1687_v5 = vpop.eup %1686 }
 0x116   : >> { %v896_v39 = vpop.f32.mrf.mxu0  ;;  %v1574_v63 = vpop.f32.mrf.mxu1  ;;  %v1099_v37 = vmul.f32 %v1083_v58, %v811_v4 }
 0x117   : >> { %v1193_v34 = vadd.f32 %v1190_v31, %v1096_v26  ;;  %v1160_v40 = vadd.f32 %v1159_v32, %v1158_v22  ;;  %v1122_v41 = vrot.slane %v1121_v33, 4  ;;  %v1177_v42 = vmul.f32 %v1174_v20, %v982_v35  ;;  %v1689_v16 = vpop.eup %1688 }
 0x118   : >> { %v974_v48 = vadd.f32 %v973_v14, %v896_v39  ;;  %v1563_v49 = vpop.f32.mrf.mxu0  ;;  %v989_v20 = vpop.f32.mrf.mxu1 }
 0x119   : >> { %v1209_v50 = vmul.f32 %v1685_v30, %v1193_v34  ;;  %v1161_v52 = vrot.slane %v1160_v40, 2  ;;  %v1123_v53 = vadd.f32 %v1122_v41, %v1121_v33  ;;  %v1178_v54 = vrot.slane %v1177_v42, 4 }
 0x11a   : >> { %v1139_v59 = vmul.f32 %v1136_v55, %v974_v48  ;;  %v909_v60 = vpop.f32.mrf.mxu0  ;;  %v995_v13 = vadd.f32 %v1573_v24, %v1563_v49 }
 0x11b   : >> { %v1212_v61 = vadd.f32 %v1209_v50, %v1097_v44  ;;  %v1162_v21 = vadd.f32 %v1161_v52, %v1160_v40  ;;  %v1124_v43 = vrot.slane %v1123_v53, 2  ;;  %v1179_v62 = vadd.f32 %v1178_v54, %v1177_v42 }
 0x11c   : >> { %v1140_v7 = vrot.slane %v1139_v59, 4  ;;  %v987_v8 = vadd.f32 %v986_v45, %v909_v60  ;;  %v1564_v9 = vpop.f32.mrf.mxu0 }
 0x11d   : >> { %v1163_v51 = vrot.slane %v1162_v21, 1  ;;  %v1125_v11 = vadd.f32 %v1124_v43, %v1123_v53  ;;  %v1180_v12 = vrot.slane %v1179_v62, 2  ;;  %v1228_v38 = vmul.f32 %v1687_v5, %v1212_v61 }
 0x11e   : >> { %v1141_v55 = vadd.f32 %v1140_v7, %v1139_v59  ;;  %v1196_v14 = vmul.f32 %v1193_v34, %v987_v8  ;;  %v912_v15 = vpop.f32.mrf.mxu0  ;;  %v998_v36 = vadd.f32 %v1574_v63, %v1564_v9 }
 0x11f   : >> { %v1164_v17 = vadd.f32 %v1163_v51, %v1162_v21  ;;  %v1126_v18 = vrot.slane %v1125_v11, 1  ;;  %v1181_v10 = vadd.f32 %v1180_v12, %v1179_v62  ;;  %v1231_v19 = vadd.f32 %v1228_v38, %v1098_v0 }
 0x120   : >> { %v1142_v57 = vrot.slane %v1141_v55, 2  ;;  %v1197_v22 = vrot.slane %v1196_v14, 4  ;;  %v990_v23 = vadd.f32 %v989_v20, %v912_v15 }
 0x121   : >> { %v1165_v25 = vadd.f32 %v1164_v17, %v2080_v56  ;;  %v1127_v26 = vadd.f32 %v1126_v18, %v1125_v11  ;;  %v1182_v24 = vrot.slane %v1181_v10, 1  ;;  %v1234_v27 = vmul.f32 %v1231_v19, %v995_v13 }
 0x122   : >> { %v1143_v28 = vadd.f32 %v1142_v57, %v1141_v55  ;;  %v1198_v29 = vadd.f32 %v1197_v22, %v1196_v14  ;;  %v1247_v30 = vmul.f32 %v1689_v16, %v1231_v19  ;;  %v1215_v31 = vmul.f32 %v1212_v61, %v990_v23 }
 0x123   : >> { %1498 = vst [vmem:[%s2088_s8] sm:$0x4] %v1165_v25  ;;  %v1128_v32 = vadd.f32 %v1127_v26, %v2080_v56  ;;  %v1183_v33 = vadd.f32 %v1182_v24, %v1181_v10  ;;  %v1235_v35 = vrot.slane %v1234_v27, 4 }
 0x124   : >> { %v1144_v39 = vrot.slane %v1143_v28, 1  ;;  %v1199_v34 = vrot.slane %v1198_v29, 2  ;;  %v1250_v40 = vadd.f32 %v1247_v30, %v1099_v37   ;;  %v1216_v41 = vrot.slane %v1215_v31, 4 }
 0x125   : >> { %1130 = vst [vmem:[%s2088_s8] sm:$0x1] %v1128_v32  ;;  %v1184_v42 = vadd.f32 %v1183_v33, %v2080_v56  ;;  %v1236_v45 = vadd.f32 %v1235_v35, %v1234_v27 }
 0x126   : >> { %v1145_v46 = vadd.f32 %v1144_v39, %v1143_v28  ;;  %v1200_v47 = vadd.f32 %v1199_v34, %v1198_v29  ;;  %v1253_v44 = vmul.f32 %v1250_v40, %v998_v36  ;;  %v1217_v48 = vadd.f32 %v1216_v41, %v1215_v31  ;;  %1264 = vst [vmem:[#allocation5] sm:$0xff] (%p457_p2), %v1250_v40 }
 0x127   : >> { %1500 = vst [vmem:[%s2088_s8] sm:$0x8] %v1184_v42  ;;  %v1237_v49 = vrot.slane %v1236_v45, 2 }
 0x128   : >> { %v1146_v50 = vadd.f32 %v1145_v46, %v2080_v56  ;;  %v1201_v52 = vrot.slane %v1200_v47, 1  ;;  %v1254_v53 = vrot.slane %v1253_v44, 4  ;;  %v1218_v54 = vrot.slane %v1217_v48, 2 }
 0x129   : >> { %v1238_v5 = vadd.f32 %v1237_v49, %v1236_v45 }
 0x12a   : >> { %1496 = vst [vmem:[%s2088_s8] sm:$0x2] %v1146_v50  ;;  %v1202_v58 = vadd.f32 %v1201_v52, %v1200_v47  ;;  %v1255_v59 = vadd.f32 %v1254_v53, %v1253_v44  ;;  %v1219_v60 = vadd.f32 %v1218_v54, %v1217_v48 }
 0x12b   : >> { %v1239_v61 = vrot.slane %v1238_v5, 1 }
 0x12c   : >> { %v1203_v21 = vadd.f32 %v1202_v58, %v2080_v56  ;;  %v1256_v43 = vrot.slane %v1255_v59, 2  ;;  %v1220_v62 = vrot.slane %v1219_v60, 1 }
 0x12d   : >> { %v1240_v63 = vadd.f32 %v1239_v61, %v1238_v5  ;;  %v2207_v5 = vmov %v1250_v40 }
 0x12e   : >> { %1502 = vst [vmem:[%s2088_s8] sm:$0x10] %v1203_v21  ;;  %v1257_v0 = vadd.f32 %v1256_v43, %v1255_v59  ;;  %v1221_v4 = vadd.f32 %v1220_v62, %v1219_v60 }
 0x12f   : >> { %v1241_v7 = vadd.f32 %v1240_v63, %v2080_v56 }
 0x130   : >> { %v1258_v8 = vrot.slane %v1257_v0, 1  ;;  %v1222_v9 = vadd.f32 %v1221_v4, %v2080_v56 }
 0x131   : >> { %1506 = vst [vmem:[%s2088_s8] sm:$0x40] %v1241_v7 }
 0x132   : >> { %v1259_v51 = vadd.f32 %v1258_v8, %v1257_v0  ;;  %1504 = vst [vmem:[%s2088_s8] sm:$0x20] %v1222_v9  ;;  %459 = sbr.rel (!%p457_p2) target bundleno = 52 (0x34), region = 140 }
 0x134   : >> { %v1260_v11 = vadd.f32 %v1259_v51, %v2080_v56 }
 0x136   : >> { %1508 = vst [vmem:[%s2088_s8] sm:$0x80] %v1260_v11 }
 0x137   : > { %1703 = shalt.err (!%p1700_p11)
}
 0x138   : > { %s1704_s21 = scalar_lea.hbm %s2120_s23, 256  ;;  %s1708_s13 = scalar_lea.hbm %s2208_s22, 2048 }
 0x139   : > { %p1705_p12 = scmp.ne.s32.totalorder %s2120_s23, %s1704_s21  ;;  %p1709_p1 = scmp.lt.s32.totalorder %s2120_s23, %s2208_s22 }
 0x13a   : > { %p1710_p2 = scmp.lt.s32.totalorder %s1708_s13, %s1704_s21 }
 0x13b   : > { %p1706_p13 = pnand %p1705_p12, %p1901_p3 }
 0x13c   : > { %p1711_p4 = por %p1710_p2, %p1709_p1 }
 0x13d   : > { %p1707_p0 = pneg %p1706_p13 }
 0x13f   : > { %p1712_p5 = pnand %p1711_p4, %p1707_p0 }
 0x141   : > { %1715 = shalt.err (!%p1712_p5)
}
 0x142   : > { %s1803_s8 = smov 128   ;;  %s1804_s12 = smov 8  }
 0x143   : > { %1579 = dma.vmem_to_hbm [thread:$0]  (%p1901_p3), %s2115_s27, 256, %s2120_s23, %s2124_s24, %s1803_s8, %s1803_s8, %s1804_s12  }
 0x144 PF: > { %s2210_s16 = sld [smem:[#allocation13_spill]] }
 0x145   : > { %s2211_s30 = sld [smem:[#allocation9_spill]] }
 0x14a   : > { %p1585_p6 = scmp.ge.s32.totalorder %s2210_s16, 2 }
 0x14b   : > { %s1296_s20 = sand.u32 1, %s2211_s30  }
 0x14c   : > { %p1582_p7 = pnand %p1585_p6, %p1910_p8  ;;  %s1297_s10 = scalar_lea.sflag [#allocation7], %s1296_s20 }
 0x14e   : > { %p1583_p9 = pneg %p1582_p7 }
 0x150   : > { %1757 = dma.done.wait (%p1583_p9), %s1297_s10, 256  }
 0x151   : > { %1759 = vsyncadd (%p1583_p9), %s1297_s10, 4294967040  ;;  %s21_s12 = sadd.s32 1, %s2210_s16   ;;  %s2213_s14 = sld [smem:[#allocation10_spill]] }
 0x152   : > { %p18_p10 = scmp.ge.s32.totalorder %s21_s12, 10   ;;  %s2214_s29 = sld [smem:[#allocation17_spill]] }
 0x153   : > { %s2215_s30 = sld [smem:[#allocation11_spill]]  ;;  %s2219_s27 = smov %s1766_s28 }
 0x154   : > { %s2216_s9 = sld [smem:[#allocation12_spill]]  ;;  %20 = sbr.rel (!%p18_p10) target bundleno = 7 (0x7), region = 151 }
 0x155   : > { %s2217_s10 = sld [smem:[#allocation14_spill]] }
 0x156   : > { %s2218_s11 = sld [smem:[#allocation15_spill]] }
 0x157   : > { %s2220_s28 = smov %s2213_s14 }
 0x159   :  { %1302 = vsyncpa [#allocation7], 1 }
 0x15a   :  { %1304 = vsyncpa [#allocation7 + $0x1], 1 }

</bundles_post_ra>
